<compile_context>
chip_gen: v7x
topology: tpu7x:2x2x1
jax: 0.10.0
libtpu: 0.0.40
codegen_flags: <defaults>
</compile_context>

<pallas_src>
import jax
import jax.numpy as jnp
from jax.experimental import pallas as pl
from jax.experimental.pallas import tpu as pltpu

SIZE_TOKEN_EMBEDDINGS = 64
HIDDEN = SIZE_TOKEN_EMBEDDINGS * 4  # 256
DROPOUT_RATE = 0.1                  # unused at inference

# Token-tile size: large enough to amortize per-grid-step overhead and feed
# the MXU on the narrow K/N dims, small enough (~6 MiB working set in f32)
# to fit v5e's 16 MiB scoped-VMEM default and v7x's 64 MiB physical VMEM.
DEFAULT_TILE_M = 2048


def _round_up(n, m):
    return ((n + m - 1) // m) * m


def ffn_kernel(x_ref, w1_ref, b1_ref, w2_ref, b2_ref, o_ref):
    # x_ref: [tm, D] f32, w1_ref: [D, H] bf16, b1_ref: [1, H] f32,
    # w2_ref: [H, D] bf16, b2_ref: [1, D] f32, o_ref: [tm, D] f32.
    x = x_ref[...].astype(jnp.bfloat16)           # in-vreg cast (free-ish)
    # Linear 1 (MXU, bf16 operands, f32 accumulate) + bias + ReLU in f32.
    h = jnp.dot(x, w1_ref[...], preferred_element_type=jnp.float32)
    h = jnp.maximum(h + b1_ref[...], 0.0)
    # Linear 2 (MXU) + bias.
    y = jnp.dot(h.astype(jnp.bfloat16), w2_ref[...],
                preferred_element_type=jnp.float32)
    # Dropout -> identity (eval mode).
    o_ref[...] = (y + b2_ref[...]).astype(o_ref.dtype)


def feed_forward(x, w1, b1, w2, b2, *, tile_m=DEFAULT_TILE_M):
    """x: [B, T, D] float32. Returns [B, T, D] float32."""
    B, T, D = x.shape
    H = w1.shape[1]
    M = B * T

    x2 = x.reshape(M, D)
    # Weights in bf16 (halves resident VMEM + MXU runs at bf16 rate);
    # biases stay f32 for the VPU adds.
    w1b = w1.astype(jnp.bfloat16)
    w2b = w2.astype(jnp.bfloat16)
    b1_2d = b1.reshape(1, H).astype(jnp.float32)
    b2_2d = b2.reshape(1, D).astype(jnp.float32)

    # Tile M; pad the token dim so it divides evenly (and satisfies the
    # sublane-divisibility rule: tm is a multiple of 8 or equals full M).
    tm = min(tile_m, _round_up(M, 8))
    m_pad = _round_up(M, tm)
    if m_pad != M:
        x2 = jnp.pad(x2, ((0, m_pad - M), (0, 0)))
    grid = (m_pad // tm,)

    itemsize = jnp.dtype(x.dtype).itemsize
    cost = pl.CostEstimate(
        flops=4 * m_pad * D * H,                       # two M*D*H matmuls
        transcendentals=0,
        bytes_accessed=(2 * m_pad * D * itemsize       # x in + y out
                        + 2 * D * H * 2                # bf16 weights
                        + (H + D) * 4),                # f32 biases
    )

    out = pl.pallas_call(
        ffn_kernel,
        out_shape=jax.ShapeDtypeStruct((m_pad, D), x.dtype),
        grid=grid,
        in_specs=[
            # Streamed activations: new block per grid step (double-buffered).
            pl.BlockSpec((tm, D), lambda i: (i, 0)),
            # Weights/biases: constant index_map -> resident in VMEM.
            pl.BlockSpec((D, H), lambda i: (0, 0)),
            pl.BlockSpec((1, H), lambda i: (0, 0)),
            pl.BlockSpec((H, D), lambda i: (0, 0)),
            pl.BlockSpec((1, D), lambda i: (0, 0)),
        ],
        out_specs=pl.BlockSpec((tm, D), lambda i: (i, 0)),
        compiler_params=pltpu.CompilerParams(
            # Independent token tiles: shard across both TCs on v7x,
            # harmless on single-TC v5e/v6e.
            dimension_semantics=("parallel",),
            vmem_limit_bytes=32 * 1024 * 1024,
        ),
        cost_estimate=cost,
    )(x2, w1b, b1_2d, w2b, b2_2d)

    return out[:M].reshape(B, T, D)


def init_params(key, d=SIZE_TOKEN_EMBEDDINGS, h=HIDDEN):
    # Mimic nn.Linear default init: U(-1/sqrt(fan_in), 1/sqrt(fan_in)),
    # deterministic via PRNGKey. Weights stored as [in, out].
    k1, k2, k3, k4 = jax.random.split(key, 4)
    bound1 = 1.0 / (d ** 0.5)
    bound2 = 1.0 / (h ** 0.5)
    w1 = jax.random.uniform(k1, (d, h), jnp.float32, -bound1, bound1)
    b1 = jax.random.uniform(k2, (h,), jnp.float32, -bound1, bound1)
    w2 = jax.random.uniform(k3, (h, d), jnp.float32, -bound2, bound2)
    b2 = jax.random.uniform(k4, (d,), jnp.float32, -bound2, bound2)
    return w1, b1, w2, b2


if __name__ == "__main__":
    key = jax.random.PRNGKey(0)
    kx, kp = jax.random.split(key)

    B, T, D = 2, 8, SIZE_TOKEN_EMBEDDINGS
    x = jax.random.normal(kx, (B, T, D), jnp.float32)
    w1, b1, w2, b2 = init_params(kp)

    y = feed_forward(x, w1, b1, w2, b2)
    y = jax.block_until_ready(y)

    # Reference check in plain f32 JAX (dropout = identity at eval).
    # Tolerance is loosened because the kernel uses bf16 matmul operands
    # (with f32 accumulation).
    ref = jnp.maximum(x.reshape(-1, D) @ w1 + b1, 0.0) @ w2 + b2
    ref = ref.reshape(B, T, D)
    assert y.shape == (B, T, D)
    assert jnp.allclose(y, ref, atol=2e-2, rtol=2e-2)

    print("KERNEL_OK")
</pallas_src>

<mosaic_0001>
module attributes {stable_mosaic.version = 11 : i64} {
  func.func @ffn_kernel(%arg0: i32, %arg1: memref<16x64xf32, #tpu.memory_space<vmem>>, %arg2: memref<64x256xbf16, #tpu.memory_space<vmem>>, %arg3: memref<1x256xf32, #tpu.memory_space<vmem>>, %arg4: memref<256x64xbf16, #tpu.memory_space<vmem>>, %arg5: memref<1x64xf32, #tpu.memory_space<vmem>>, %arg6: memref<16x64xf32, #tpu.memory_space<vmem>>) attributes {dimension_semantics = [#tpu.dimension_semantics<parallel>], iteration_bounds = array<i64: 1>, scalar_prefetch = 0 : i64, scratch_operands = 0 : i64, tpu.core_type = #tpu.core_type<tc>, window_params = [{transform_indices = @transform_0, window_bounds = array<i64: 16, 64>}, {pipeline_mode = #tpu.pipeline_mode<synchronous>, transform_indices = @transform_1, window_bounds = array<i64: 64, 256>}, {pipeline_mode = #tpu.pipeline_mode<synchronous>, transform_indices = @transform_2, window_bounds = array<i64: 1, 256>}, {pipeline_mode = #tpu.pipeline_mode<synchronous>, transform_indices = @transform_3, window_bounds = array<i64: 256, 64>}, {pipeline_mode = #tpu.pipeline_mode<synchronous>, transform_indices = @transform_4, window_bounds = array<i64: 1, 64>}, {transform_indices = @transform_5, window_bounds = array<i64: 16, 64>}]} {
    %c0 = arith.constant 0 : index
    %c0_0 = arith.constant 0 : index
    %0 = vector.load %arg1[%c0, %c0_0] : memref<16x64xf32, #tpu.memory_space<vmem>>, vector<16x64xf32>
    %1 = arith.truncf %0 : vector<16x64xf32> to vector<16x64xbf16>
    %c0_1 = arith.constant 0 : index
    %c0_2 = arith.constant 0 : index
    %2 = vector.load %arg2[%c0_1, %c0_2] : memref<64x256xbf16, #tpu.memory_space<vmem>>, vector<64x256xbf16>
    %cst = arith.constant dense<0.000000e+00> : vector<16x256xf32>
    %3 = tpu.matmul %1, %2, %cst {dimension_numbers = #tpu.dot_dimension_numbers<[1], [0], [0], [1], [0, 0, 1, 1], [], []>} : vector<16x64xbf16>, vector<64x256xbf16>, vector<16x256xf32> -> vector<16x256xf32>
    %c0_3 = arith.constant 0 : index
    %c0_4 = arith.constant 0 : index
    %4 = vector.load %arg3[%c0_3, %c0_4] : memref<1x256xf32, #tpu.memory_space<vmem>>, vector<1x256xf32>
    %5 = vector.broadcast %4 : vector<1x256xf32> to vector<16x256xf32>
    %6 = arith.addf %3, %5 : vector<16x256xf32>
    %cst_5 = arith.constant 0.000000e+00 : f32
    %7 = vector.broadcast %cst_5 : f32 to vector<16x256xf32>
    %8 = arith.maximumf %6, %7 : vector<16x256xf32>
    %9 = arith.truncf %8 : vector<16x256xf32> to vector<16x256xbf16>
    %c0_6 = arith.constant 0 : index
    %c0_7 = arith.constant 0 : index
    %10 = vector.load %arg4[%c0_6, %c0_7] : memref<256x64xbf16, #tpu.memory_space<vmem>>, vector<256x64xbf16>
    %cst_8 = arith.constant dense<0.000000e+00> : vector<16x64xf32>
    %11 = tpu.matmul %9, %10, %cst_8 {dimension_numbers = #tpu.dot_dimension_numbers<[1], [0], [0], [1], [0, 0, 1, 1], [], []>} : vector<16x256xbf16>, vector<256x64xbf16>, vector<16x64xf32> -> vector<16x64xf32>
    %c0_9 = arith.constant 0 : index
    %c0_10 = arith.constant 0 : index
    %12 = vector.load %arg5[%c0_9, %c0_10] : memref<1x64xf32, #tpu.memory_space<vmem>>, vector<1x64xf32>
    %13 = vector.broadcast %12 : vector<1x64xf32> to vector<16x64xf32>
    %14 = arith.addf %11, %13 : vector<16x64xf32>
    %c0_11 = arith.constant 0 : index
    %c0_12 = arith.constant 0 : index
    %15 = vector.load %arg6[%c0_11, %c0_12] : memref<16x64xf32, #tpu.memory_space<vmem>>, vector<16x64xf32>
    tpu.vector_store %arg6[%c0_11, %c0_12], %14 {strides = array<i32>} : memref<16x64xf32, #tpu.memory_space<vmem>>, vector<16x64xf32>,
    return
  }
  func.func @transform_0(%arg0: i32) -> (i32, i32) {
    %c0_i32 = arith.constant 0 : i32
    %c0_i32_0 = arith.constant 0 : i32
    return %arg0, %c0_i32 : i32, i32
  }
  func.func @transform_1(%arg0: i32) -> (i32, i32) {
    %c0_i32 = arith.constant 0 : i32
    %c0_i32_0 = arith.constant 0 : i32
    %c0_i32_1 = arith.constant 0 : i32
    return %c0_i32, %c0_i32_0 : i32, i32
  }
  func.func @transform_2(%arg0: i32) -> (i32, i32) {
    %c0_i32 = arith.constant 0 : i32
    %c0_i32_0 = arith.constant 0 : i32
    %c0_i32_1 = arith.constant 0 : i32
    return %c0_i32, %c0_i32_0 : i32, i32
  }
  func.func @transform_3(%arg0: i32) -> (i32, i32) {
    %c0_i32 = arith.constant 0 : i32
    %c0_i32_0 = arith.constant 0 : i32
    %c0_i32_1 = arith.constant 0 : i32
    return %c0_i32, %c0_i32_0 : i32, i32
  }
  func.func @transform_4(%arg0: i32) -> (i32, i32) {
    %c0_i32 = arith.constant 0 : i32
    %c0_i32_0 = arith.constant 0 : i32
    %c0_i32_1 = arith.constant 0 : i32
    return %c0_i32, %c0_i32_0 : i32, i32
  }
  func.func @transform_5(%arg0: i32) -> (i32, i32) {
    %c0_i32 = arith.constant 0 : i32
    %c0_i32_0 = arith.constant 0 : i32
    return %arg0, %c0_i32 : i32, i32
  }
}

</mosaic_0001>

<bundles_post_ra>
// kernel: tpu_custom_call.1
= control target key start
LH: loop header
LB: loop body
LE: loop exit
PB: predicated region body
PF: predicated region fallthrough
CT: control target
= control target key end

     0   :  { %v436_v2 = vmov 0   ;;  %vm85_vm0 = vcmask 523264   ;;  %s569_s0 = inlined_call_operand.vmem [shape: f32[16,64], index: 0, kind: input, shape index: {}]   ;;  %s570_s1 = inlined_call_operand.vmem [shape: bf16[64,256], index: 1, kind: input, shape index: {}]   ;;  %s571_s2 = inlined_call_operand.vmem [shape: f32[1,256], index: 2, kind: input, shape index: {}]   ;;  %s572_s3 = inlined_call_operand.vmem [shape: bf16[256,64], index: 3, kind: input, shape index: {}]   ;;  %s573_s4 = inlined_call_operand.vmem [shape: f32[1,64], index: 4, kind: input, shape index: {}]   ;;  %s574_s5 = inlined_call_operand.hbm [shape: f32[16,64], index: 5, kind: output, shape index: {}]  }
   0x1   :  { %v384_v0 = vld [vmem:[%s570_s1 + $0x4] ss:$8 sps:$4 sm:$0xff]   ;;  %v386_v1 = vld [vmem:[%s570_s1] ss:$8 sps:$4 sm:$0xff]   ;;  %121 = vmatprep.mubr.bf16.mxu0 %v436_v2  ;;  %v387_v3 = vld [vmem:[%s570_s1 + $0x14] ss:$8 sps:$4 sm:$0xff]  }
   0x2   :  { %89 = vmatprep.subr.bf16.mxu0 %v384_v0  ;;  %v389_v4 = vld [vmem:[%s570_s1 + $0x10] ss:$8 sps:$4 sm:$0xff]   ;;  %v390_v5 = vld [vmem:[%s570_s1 + $0x24] ss:$8 sps:$4 sm:$0xff]   ;;  %v392_v6 = vld [vmem:[%s570_s1 + $0x20] ss:$8 sps:$4 sm:$0xff]  }
   0x3   :  { %90 = vmatpush1.bf16.msra.mxu0 %v386_v1  ;;  %v393_v7 = vld [vmem:[%s570_s1 + $0x34] ss:$8 sps:$4 sm:$0xff]   ;;  %v396_v8 = vld [vmem:[%s572_s3 + $0x40] sm:$0xff]   ;;  %v398_v10 = vld [vmem:[%s572_s3 + $0x48] sm:$0xff]  }
   0x4   :  { %91 = vmatprep.subr.bf16.mxu0 %v387_v3  ;;  %v397_v9 = vld [vmem:[%s572_s3] sm:$0xff]   ;;  %358 = vmatprep.subr.bf16.mxu1 %v396_v8  ;;  %v395_v11 = vld [vmem:[%s570_s1 + $0x30] ss:$8 sps:$4 sm:$0xff]   ;;  %v399_v13 = vld [vmem:[%s572_s3 + $0x8] sm:$0xff]  }
   0x5   :  { %v22_v12 = vld [vmem:[%s569_s0] sm:$0xff]  ;;  %359 = vmatpush3.bf16.msra.mxu1 %v397_v9  ;;  %v400_v14 = vld [vmem:[%s572_s3 + $0x50] sm:$0xff]   ;;  %v23_v15 = vld [vmem:[%s569_s0 + $0x8] sm:$0xff] }
   0x6   :  { %360 = vmatprep.subr.bf16.mxu1 %v398_v10  ;;  %v401_v16 = vld [vmem:[%s572_s3 + $0x10] sm:$0xff]   ;;  %v24_v17 = vpack.c.bf16 %v23_v15, %v22_v12  ;;  %v402_v18 = vld [vmem:[%s572_s3 + $0x58] sm:$0xff]   ;;  %v404_v20 = vld [vmem:[%s572_s3 + $0x60] sm:$0xff]  }
   0x7   :  { %92 = vmatpush1.bf16.msra.mxu0 %v389_v4  ;;  %v403_v19 = vld [vmem:[%s572_s3 + $0x18] sm:$0xff]  }
   0x8   :  { %93 = vmatprep.subr.bf16.mxu0 %v390_v5 }
   0x9   :  { %361 = vmatpush3.bf16.msra.mxu1 %v399_v13 }
   0xa   :  { %362 = vmatprep.subr.bf16.mxu1 %v400_v14 }
   0xb   :  { %94 = vmatpush1.bf16.msra.mxu0 %v392_v6 }
   0xc   :  { %95 = vmatprep.subr.bf16.mxu0 %v393_v7 }
   0xd   :  { %363 = vmatpush3.bf16.msra.mxu1 %v401_v16 }
   0xe   :  { %364 = vmatprep.subr.bf16.mxu1 %v402_v18 }
   0xf   :  { %96 = vmatpush1.bf16.msra.mxu0 %v395_v11 }
  0x12   :  { %340 = vmatmul.mubr.msk.bf16.vlgmr.msra.gmra.mrb[0].mxu0 %vm85_vm0, %v24_v17 }
  0x13   :  { %10 = vsyncpa [#allocation3], 0  ;;  %365 = vmatpush3.bf16.msra.mxu1 %v403_v19  ;;  %v405_v21 = vld [vmem:[%s572_s3 + $0x20] sm:$0xff]   ;;  %v406_v22 = vld [vmem:[%s572_s3 + $0x68] sm:$0xff]   ;;  %v35_v28 = vlaneseq  ;;  %s437_s20 = smov [#allocation2]  }
  0x14   :  { %366 = vmatprep.subr.bf16.mxu1 %v404_v20  ;;  %v407_v23 = vld [vmem:[%s572_s3 + $0x28] sm:$0xff]   ;;  %v408_v24 = vld [vmem:[%s572_s3 + $0x70] sm:$0xff]   ;;  %v410_v26 = vld [vmem:[%s572_s3 + $0x78] sm:$0xff]   ;;  %s321_s21 = sshll.u32 %s437_s20, 4  ;;  %s322_s21 = int_to_ptr.vmem [resolvable:$true] %s321_s21 }
  0x15   :  { %v409_v25 = vld [vmem:[%s572_s3 + $0x30] sm:$0xff]   ;;  %v411_v27 = vld [vmem:[%s572_s3 + $0x38] sm:$0xff]   ;;  %v36_v29 = vshrl.u32 %v35_v28, 7  ;;  %v33_v31 = vld [vmem:[%s571_s2] sm:$0x3]  ;;  %s412_s22 = scalar_lea.vmem %s322_s21, 256  ;;  %p417_p1 = scmp.lt.s32.totalorder %s322_s21, %s322_s21 }
  0x16   :  { %v341_v50 = vld [vmem:[%s573_s4] ss:$0 sm:$0xff]  ;;  %p413_p0 = scmp.ne.s32.totalorder %s322_s21, %s412_s22  ;;  %p418_p2 = scmp.lt.s32.totalorder %s412_s22, %s412_s22 }
  0x17   :  { %367 = vmatpush3.bf16.msra.mxu1 %v405_v21  ;;  %v37_v30 = vsub.s32 0, %v36_v29  ;;  %v41_v32 = vsub.s32 1, %v36_v29 }
  0x18   :  { %368 = vmatprep.subr.bf16.mxu1 %v406_v22  ;;  %p419_p3 = por %p418_p2, %p417_p1 }
  0x19   :  { %v38_v33 = vrot.slane %v33_v31, %v37_v30  ;;  %v42_v34 = vrot.slane %v33_v31, %v41_v32 }
  0x1a   :  { %p420_p4 = pnand %p419_p3, %p413_p0 }
  0x1b   :  { %369 = vmatpush3.bf16.msra.mxu1 %v407_v23 }
  0x1c   :  { %370 = vmatprep.subr.bf16.mxu1 %v408_v24 }
  0x1f   :  { %371 = vmatpush3.bf16.msra.mxu1 %v409_v25 }
  0x20   :  { %372 = vmatprep.subr.bf16.mxu1 %v410_v26 }
  0x23   :  { %373 = vmatpush3.bf16.msra.mxu1 %v411_v27 }
  0xe5   :  { %v123_v35 = vpop.f32.mrb[0].mxu0 }
  0xe6   :  { %v124_v36 = vadd.f32 %v123_v35, %v38_v33  ;;  %v125_v37 = vpop.f32.mrb[1].mxu0 }
  0xe7   :  { %v126_v38 = vadd.f32 %v125_v37, %v42_v34  ;;  %v127_v39 = vpop.f32.mrb[2].mxu0 }
  0xe8   :  { %v128_v40 = vadd.f32 %v127_v39, %v38_v33  ;;  %v129_v41 = vpop.f32.mrb[3].mxu0  ;;  %v132_v43 = vmax.f32 %v124_v36, 0.0 }
  0xe9   :  { %v130_v42 = vadd.f32 %v129_v41, %v42_v34  ;;  %v133_v45 = vmax.f32 %v126_v38, 0.0 }
  0xea   :  { %v134_v44 = vmax.f32 %v128_v40, 0.0 }
  0xeb   :  { %v135_v46 = vmax.f32 %v130_v42, 0.0 }
  0xec   :  { %v136_v47 = vpack.c.bf16 %v134_v44, %v132_v43 }
  0xed   :  { %v137_v48 = vpack.c.bf16 %v135_v46, %v133_v45 }
  0xef   :  { %305 = vmatprep.mubr.bf16.mxu1 %v137_v48 }
  0xf0   :  { %306 = vmatmul.mubr.bf16.vlgmr.msra.gmra.mrb[0].mxu1 %v136_v47 }
 0x1c3   :  { %v374_v49 = vpop.f32.mrb[0].mxu1 }
 0x1c4   :  { %v375_v51 = vpop.f32.mrb[1].mxu1 }
 0x1c5   :  { %v376_v52 = vadd.f32 %v375_v51, %v374_v49  ;;  %v377_v53 = vpop.f32.mrb[2].mxu1 }
 0x1c6   :  { %v378_v54 = vpop.f32.mrb[3].mxu1 }
 0x1c7   :  { %v308_v55 = vadd.f32 %v376_v52, %v341_v50  ;;  %v379_v56 = vadd.f32 %v378_v54, %v377_v53 }
 0x1c9   :  { %314 = vst.msk [vmem:[#allocation2] sm:$0xff] %vm85_vm0, %v308_v55  ;;  %v311_v57 = vadd.f32 %v379_v56, %v341_v50 }
 0x1cb   :  { %315 = vst.msk [vmem:[#allocation2 + $0x8] sm:$0xff] %vm85_vm0, %v311_v57 }
 0x1cc   :  { %423 = shalt.err (!%p420_p4)
}
 0x1cd   :  { %s424_s23 = scalar_lea.hbm %s574_s5, 256 }
 0x1ce   :  { %p425_p5 = scmp.ne.s32.totalorder %s574_s5, %s424_s23  ;;  %p428_p6 = scmp.lt.u32.totalorder %s424_s23, %s574_s5 }
 0x1d0   :  { %p430_p7 = pnand %p428_p6, %p425_p5 }
 0x1d2   :  { %433 = shalt.err (!%p430_p7)
}
 0x1d3   :  { %s438_s0 = smov 128   ;;  %s439_s28 = smov 8  }
 0x1d4   :  { %327 = dma.vmem_to_hbm [thread:$0]  %s322_s21, 256, %s574_s5, [#allocation3], %s438_s0, %s438_s0, %s439_s28  }
 0x1d5   :  { %434 = dma.done.wait [#allocation3], 256  }
 0x1d6   :  { %435 = vsyncadd [#allocation3], 4294967040 }
 0x1d7   :  { %331 = vsyncpa [#allocation3], 1 }

</bundles_post_ra>
